<compile_context>
chip_gen: v7x
topology: tpu7x:2x2x1
jax: 0.10.0
libtpu: 0.0.40
codegen_flags: <defaults>
</compile_context>

<pallas_src>
import functools

import jax
import jax.numpy as jnp
from jax.experimental import pallas as pl
from jax.experimental.pallas import tpu as pltpu


def _dwconv_kernel(x_ref, w_ref, b_ref, o_ref, *, K, Lt, n_l_tiles):
    """One (batch-tile, L-tile) grid step, NCL layout (L on lanes).

    x_ref : (Bt, C_in, L_pad)   full (padded) sequence for this batch tile
    w_ref : (C_out, K*C_in)     fused depthwise+pointwise weight
    b_ref : (C_out, 1)          fused bias
    o_ref : (Bt, C_out, Lt)     output tile
    """
    if n_l_tiles == 1:
        base = 0                                         # all slices static
    else:
        base = pl.multiple_of(pl.program_id(1) * Lt, 128)

    w = w_ref[...]                                       # (C_out, K*C_in)
    b = b_ref[...]                                       # (C_out, 1), f32
    Bt = o_ref.shape[0]
    for i in range(Bt):                                  # small static batch tile
        # im2col over the K taps: rows ordered (k major, c_in minor), matching
        # the flattening of the fused weight. One MXU matmul per batch element.
        taps = [x_ref[i, :, pl.ds(base + k, Lt)] for k in range(K)]
        xcat = jnp.concatenate(taps, axis=0)             # (K*C_in, Lt)
        acc = jnp.dot(w, xcat, preferred_element_type=jnp.float32)  # (C_out, Lt)
        o_ref[i] = (acc + b).astype(o_ref.dtype)


def fuse_params(w_dw, b_dw, w_pw, b_pw, dim_in, compute_dtype=jnp.float32):
    """Pre-compose depthwise + pointwise params. Call ONCE, outside the forward.

    w_dw : (dim_out, 1, K)        nn.Conv1d(dim_in, dim_out, K, groups=dim_in).weight
    b_dw : (dim_out,)
    w_pw : (dim_out, dim_out, 1)  nn.Conv1d(dim_out, dim_out, 1).weight
    b_pw : (dim_out,)
    returns w_comb (dim_out, K, dim_in), b_comb (dim_out, 1)
    """
    dim_out, _, K = w_dw.shape
    assert dim_out % dim_in == 0, "groups=dim_in requires dim_out % dim_in == 0"
    mult = dim_out // dim_in
    # onehot[c, c_in] = 1 iff depthwise output channel c reads input channel c_in
    onehot = (jnp.arange(dim_out)[:, None] // mult
              == jnp.arange(dim_in)[None, :]).astype(jnp.float32)       # (dim_out, dim_in)
    w_comb = jnp.einsum('oc,ck,ci->oki',
                        w_pw[:, :, 0].astype(jnp.float32),
                        w_dw[:, 0, :].astype(jnp.float32),
                        onehot)                                          # (dim_out, K, dim_in)
    b_comb = (w_pw[:, :, 0].astype(jnp.float32) @ b_dw.astype(jnp.float32)
              + b_pw.astype(jnp.float32)).reshape(dim_out, 1)
    return w_comb.astype(compute_dtype), b_comb


def depthwise_conv1d(x_ncl, w_comb, b_comb, *, l_tile=512, batch_tile=None,
                     compute_dtype=None):
    """Forward pass matching DepthwiseConv1d (conv -> proj_out), NCL in / NCL out.

    x_ncl  : (B, dim_in, L) float32
    w_comb : (dim_out, K, dim_in) from fuse_params()
    b_comb : (dim_out, 1)
    returns (B, dim_out, L - K + 1)
    """
    B, C_in, L = x_ncl.shape
    C_out, K, C_in_w = w_comb.shape
    assert C_in_w == C_in
    L_out = L - K + 1
    assert L_out >= 1

    if compute_dtype is None:
        compute_dtype = w_comb.dtype     # pass bf16 w_comb / compute_dtype on v6e/v7x

    # L tiling: single tile when L_out is small (toy shapes -> one grid step per
    # batch tile), else 128-aligned tiles; the K-1 halo comes from padding the
    # input once and slicing inside the kernel (input block loaded once per
    # batch tile since its block index is invariant along the L-tile axis).
    if L_out <= l_tile:
        Lt, nLt = L_out, 1
        x_pad = x_ncl
    else:
        Lt = max(128, (l_tile // 128) * 128)
        nLt = pl.cdiv(L_out, Lt)
        L_pad_target = nLt * Lt + K - 1
        x_pad = jnp.pad(x_ncl, ((0, 0), (0, 0), (0, L_pad_target - L)))
    L_pad = x_pad.shape[2]

    Bt = batch_tile if batch_tile is not None else (B if B <= 8 else 1)
    nB = pl.cdiv(B, Bt)

    x_pad = x_pad.astype(compute_dtype)
    w_flat = w_comb.reshape(C_out, K * C_in).astype(compute_dtype)
    b_comb = b_comb.astype(jnp.float32)

    kernel = functools.partial(_dwconv_kernel, K=K, Lt=Lt, n_l_tiles=nLt)

    out = pl.pallas_call(
        kernel,
        out_shape=jax.ShapeDtypeStruct((B, C_out, L_out), x_ncl.dtype),
        grid_spec=pltpu.PrefetchScalarGridSpec(
            num_scalar_prefetch=0,
            grid=(nB, nLt),
            in_specs=[
                pl.BlockSpec((Bt, C_in, L_pad), lambda b, l: (b, 0, 0)),
                pl.BlockSpec((C_out, K * C_in), lambda b, l: (0, 0)),
                pl.BlockSpec((C_out, 1), lambda b, l: (0, 0)),
            ],
            out_specs=pl.BlockSpec((Bt, C_out, Lt), lambda b, l: (b, 0, l)),
        ),
        compiler_params=pltpu.CompilerParams(
            dimension_semantics=("parallel", "parallel"),
            vmem_limit_bytes=32 * 1024 * 1024,
        ),
    )(x_pad, w_flat, b_comb)
    return out


def _reference(x_ncl, w_dw, b_dw, w_pw, b_pw):
    """Pure-JAX reference using lax conv (mirrors PyTorch Conv1d semantics)."""
    dim_in = x_ncl.shape[1]
    y = jax.lax.conv_general_dilated(
        x_ncl, w_dw, window_strides=(1,), padding="VALID",
        dimension_numbers=("NCH", "OIH", "NCH"),
        feature_group_count=dim_in) + b_dw[None, :, None]
    z = jax.lax.conv_general_dilated(
        y, w_pw, window_strides=(1,), padding="VALID",
        dimension_numbers=("NCH", "OIH", "NCH")) + b_pw[None, :, None]
    return z


if __name__ == "__main__":
    # Small shapes consistent with the module: dim_in=4, dim_out=8 (groups=dim_in
    # with channel multiplier 2), kernel_size=3, batch=2, length=16.
    B, dim_in, dim_out, K, L = 2, 4, 8, 3, 16

    key = jax.random.PRNGKey(0)
    k_x, k_wdw, k_bdw, k_wpw, k_bpw = jax.random.split(key, 5)

    x = jax.random.normal(k_x, (B, dim_in, L), jnp.float32)
    # Parameter shapes exactly as PyTorch's __init__ implies:
    w_dw = jax.random.normal(k_wdw, (dim_out, 1, K), jnp.float32) * 0.2
    b_dw = jax.random.normal(k_bdw, (dim_out,), jnp.float32) * 0.1
    w_pw = jax.random.normal(k_wpw, (dim_out, dim_out, 1), jnp.float32) * 0.2
    b_pw = jax.random.normal(k_bpw, (dim_out,), jnp.float32) * 0.1

    # Weight fusion done once, hoisted out of the per-forward path.
    w_comb, b_comb = fuse_params(w_dw, b_dw, w_pw, b_pw, dim_in)

    out = depthwise_conv1d(x, w_comb, b_comb)
    out = jax.block_until_ready(out)

    ref = _reference(x, w_dw, b_dw, w_pw, b_pw)
    assert out.shape == (B, dim_out, L - K + 1), out.shape
    assert jnp.allclose(out, ref, atol=1e-4, rtol=1e-4), "mismatch vs reference"

    print("KERNEL_OK")
</pallas_src>

<mosaic_0001>
module attributes {stable_mosaic.version = 11 : i64} {
  func.func @_dwconv_kernel(%arg0: i32, %arg1: i32, %arg2: memref<2x4x16xf32, #tpu.memory_space<vmem>>, %arg3: memref<8x12xf32, #tpu.memory_space<vmem>>, %arg4: memref<8x1xf32, #tpu.memory_space<vmem>>, %arg5: memref<2x8x14xf32, #tpu.memory_space<vmem>>) attributes {dimension_semantics = [#tpu.dimension_semantics<parallel>, #tpu.dimension_semantics<parallel>], iteration_bounds = array<i64: 1, 1>, scalar_prefetch = 0 : i64, scratch_operands = 0 : i64, tpu.core_type = #tpu.core_type<tc>, window_params = [{transform_indices = @transform_0, window_bounds = array<i64: 2, 4, 16>}, {pipeline_mode = #tpu.pipeline_mode<synchronous>, transform_indices = @transform_1, window_bounds = array<i64: 8, 12>}, {pipeline_mode = #tpu.pipeline_mode<synchronous>, transform_indices = @transform_2, window_bounds = array<i64: 8, 1>}, {transform_indices = @transform_3, window_bounds = array<i64: 2, 8, 14>}]} {
    %c0 = arith.constant 0 : index
    %c0_0 = arith.constant 0 : index
    %0 = vector.load %arg3[%c0, %c0_0] : memref<8x12xf32, #tpu.memory_space<vmem>>, vector<8x12xf32>
    %c0_1 = arith.constant 0 : index
    %c0_2 = arith.constant 0 : index
    %1 = vector.load %arg4[%c0_1, %c0_2] : memref<8x1xf32, #tpu.memory_space<vmem>>, vector<8x1xf32>
    %c0_3 = arith.constant 0 : index
    %c0_4 = arith.constant 0 : index
    %c0_5 = arith.constant 0 : index
    %2 = vector.load %arg2[%c0_3, %c0_4, %c0_5] : memref<2x4x16xf32, #tpu.memory_space<vmem>>, vector<1x4x14xf32>
    %3 = vector.shape_cast %2 : vector<1x4x14xf32> to vector<4x14xf32>
    %c0_6 = arith.constant 0 : index
    %c0_7 = arith.constant 0 : index
    %c1 = arith.constant 1 : index
    %4 = vector.load %arg2[%c0_6, %c0_7, %c1] : memref<2x4x16xf32, #tpu.memory_space<vmem>>, vector<1x4x14xf32>
    %5 = vector.shape_cast %4 : vector<1x4x14xf32> to vector<4x14xf32>
    %c0_8 = arith.constant 0 : index
    %c0_9 = arith.constant 0 : index
    %c2 = arith.constant 2 : index
    %6 = vector.load %arg2[%c0_8, %c0_9, %c2] : memref<2x4x16xf32, #tpu.memory_space<vmem>>, vector<1x4x14xf32>
    %7 = vector.shape_cast %6 : vector<1x4x14xf32> to vector<4x14xf32>
    %8 = tpu.concatenate %3, %5, %7 in 0 : vector<4x14xf32>, vector<4x14xf32>, vector<4x14xf32> -> vector<12x14xf32>
    %cst = arith.constant dense<0.000000e+00> : vector<8x14xf32>
    %9 = tpu.matmul %0, %8, %cst {dimension_numbers = #tpu.dot_dimension_numbers<[1], [0], [0], [1], [0, 0, 1, 1], [], []>} : vector<8x12xf32>, vector<12x14xf32>, vector<8x14xf32> -> vector<8x14xf32>
    %10 = vector.broadcast %1 : vector<8x1xf32> to vector<8x14xf32>
    %11 = arith.addf %9, %10 : vector<8x14xf32>
    %c0_10 = arith.constant 0 : index
    %c0_11 = arith.constant 0 : index
    %c0_12 = arith.constant 0 : index
    %12 = vector.load %arg5[%c0_10, %c0_11, %c0_12] : memref<2x8x14xf32, #tpu.memory_space<vmem>>, vector<1x8x14xf32>
    %13 = vector.shape_cast %12 : vector<1x8x14xf32> to vector<8x14xf32>
    %14 = vector.shape_cast %11 : vector<8x14xf32> to vector<1x8x14xf32>
    tpu.vector_store %arg5[%c0_10, %c0_11, %c0_12], %14 {strides = array<i32>} : memref<2x8x14xf32, #tpu.memory_space<vmem>>, vector<1x8x14xf32>,
    %c1_13 = arith.constant 1 : index
    %c0_14 = arith.constant 0 : index
    %c0_15 = arith.constant 0 : index
    %15 = vector.load %arg2[%c1_13, %c0_14, %c0_15] : memref<2x4x16xf32, #tpu.memory_space<vmem>>, vector<1x4x14xf32>
    %16 = vector.shape_cast %15 : vector<1x4x14xf32> to vector<4x14xf32>
    %c1_16 = arith.constant 1 : index
    %c0_17 = arith.constant 0 : index
    %c1_18 = arith.constant 1 : index
    %17 = vector.load %arg2[%c1_16, %c0_17, %c1_18] : memref<2x4x16xf32, #tpu.memory_space<vmem>>, vector<1x4x14xf32>
    %18 = vector.shape_cast %17 : vector<1x4x14xf32> to vector<4x14xf32>
    %c1_19 = arith.constant 1 : index
    %c0_20 = arith.constant 0 : index
    %c2_21 = arith.constant 2 : index
    %19 = vector.load %arg2[%c1_19, %c0_20, %c2_21] : memref<2x4x16xf32, #tpu.memory_space<vmem>>, vector<1x4x14xf32>
    %20 = vector.shape_cast %19 : vector<1x4x14xf32> to vector<4x14xf32>
    %21 = tpu.concatenate %16, %18, %20 in 0 : vector<4x14xf32>, vector<4x14xf32>, vector<4x14xf32> -> vector<12x14xf32>
    %cst_22 = arith.constant dense<0.000000e+00> : vector<8x14xf32>
    %22 = tpu.matmul %0, %21, %cst_22 {dimension_numbers = #tpu.dot_dimension_numbers<[1], [0], [0], [1], [0, 0, 1, 1], [], []>} : vector<8x12xf32>, vector<12x14xf32>, vector<8x14xf32> -> vector<8x14xf32>
    %23 = vector.broadcast %1 : vector<8x1xf32> to vector<8x14xf32>
    %24 = arith.addf %22, %23 : vector<8x14xf32>
    %c1_23 = arith.constant 1 : index
    %c0_24 = arith.constant 0 : index
    %c0_25 = arith.constant 0 : index
    %25 = vector.load %arg5[%c1_23, %c0_24, %c0_25] : memref<2x8x14xf32, #tpu.memory_space<vmem>>, vector<1x8x14xf32>
    %26 = vector.shape_cast %25 : vector<1x8x14xf32> to vector<8x14xf32>
    %27 = vector.shape_cast %24 : vector<8x14xf32> to vector<1x8x14xf32>
    tpu.vector_store %arg5[%c1_23, %c0_24, %c0_25], %27 {strides = array<i32>} : memref<2x8x14xf32, #tpu.memory_space<vmem>>, vector<1x8x14xf32>,
    return
  }
  func.func @transform_0(%arg0: i32, %arg1: i32) -> (i32, i32, i32) {
    %c0_i32 = arith.constant 0 : i32
    %c0_i32_0 = arith.constant 0 : i32
    %c0_i32_1 = arith.constant 0 : i32
    return %arg0, %c0_i32, %c0_i32_0 : i32, i32, i32
  }
  func.func @transform_1(%arg0: i32, %arg1: i32) -> (i32, i32) {
    %c0_i32 = arith.constant 0 : i32
    %c0_i32_0 = arith.constant 0 : i32
    %c0_i32_1 = arith.constant 0 : i32
    return %c0_i32, %c0_i32_0 : i32, i32
  }
  func.func @transform_2(%arg0: i32, %arg1: i32) -> (i32, i32) {
    %c0_i32 = arith.constant 0 : i32
    %c0_i32_0 = arith.constant 0 : i32
    %c0_i32_1 = arith.constant 0 : i32
    return %c0_i32, %c0_i32_0 : i32, i32
  }
  func.func @transform_3(%arg0: i32, %arg1: i32) -> (i32, i32, i32) {
    %c0_i32 = arith.constant 0 : i32
    %c0_i32_0 = arith.constant 0 : i32
    return %arg0, %c0_i32, %arg1 : i32, i32, i32
  }
}

</mosaic_0001>

<bundles_post_ra>
// kernel: tpu_custom_call.1
= control target key start
LH: loop header
LB: loop body
LE: loop exit
PB: predicated region body
PF: predicated region fallthrough
CT: control target
= control target key end

     0   :  { %8 = vsyncpa [#allocation3], 0  ;;  %s391_s0 = inlined_call_operand.vmem [shape: f32[2,4,16], index: 0, kind: input, shape index: {}]   ;;  %s392_s1 = inlined_call_operand.hbm [shape: f32[8,12], index: 1, kind: input, shape index: {}]   ;;  %s393_s2 = inlined_call_operand.vmem [shape: f32[8,1], index: 2, kind: input, shape index: {}]   ;;  %s394_s3 = inlined_call_operand.hbm [shape: f32[2,8,14], index: 3, kind: output, shape index: {}]  }
   0x1   :  { %9 = vsyncpa [#allocation4], 0  ;;  %s327_s12 = smov [#allocation2]   ;;  %s279_s16 = scalar_lea.hbm %s392_s1, 128 }
   0x2   :  { %s18_s13 = sshll.u32 %s327_s12, 4  ;;  %p280_p0 = scmp.ne.s32.totalorder %s392_s1, %s279_s16  ;;  %s19_s13 = int_to_ptr.vmem [resolvable:$true] %s18_s13 }
   0x3   :  { %p283_p1 = scmp.lt.u32.totalorder %s279_s16, %s392_s1 }
   0x5   :  { %p285_p2 = pnand %p283_p1, %p280_p0 }
   0x7   :  { %288 = shalt.err (!%p285_p2)
}
   0x8   :  { %s289_s21 = scalar_lea.vmem %s19_s13, 128  ;;  %p294_p4 = scmp.lt.s32.totalorder %s19_s13, %s19_s13 }
   0x9   :  { %p290_p3 = scmp.ne.s32.totalorder %s19_s13, %s289_s21  ;;  %p295_p5 = scmp.lt.s32.totalorder %s289_s21, %s289_s21 }
   0xb   :  { %p296_p6 = por %p295_p5, %p294_p4 }
   0xd   :  { %p297_p7 = pnand %p296_p6, %p290_p3 }
   0xf   :  { %300 = shalt.err (!%p297_p7)
}
  0x10   :  { %21 = dma.hbm_to_vmem [thread:$0]  %s392_s1, 128, %s19_s13, [#allocation3]  }
  0x11   :  { %323 = dma.done.wait [#allocation3], 128  }
  0x12   :  { %324 = vsyncadd [#allocation3], 4294967168  ;;  %v328_v0 = vmov 0.0|0.0   ;;  %v29_v1 = vld [vmem:[%s391_s0] sm:$0xf]  ;;  %vm329_vm0 = vmmov 0  }
  0x13   :  { %248 = vmatprep.subr.bf16.mxu0 %v328_v0  ;;  %252 = vmatprep.subr.bf16.mxu1 %v328_v0  ;;  %v225_v2 = vld [vmem:[%s391_s0 + $0x4] sm:$0xf]  ;;  %v31_v3 = vrot.slane %v29_v1, 4  ;;  %v330_v5 = vmov 0.0   ;;  %v331_v8 = vmov 0   ;;  %s332_s29 = smov 127  }
  0x14   :  { %v125_v4 = vrot.slane %v225_v2, 4  ;;  %238 = vmatprep.mubr.msk.f32.mxu0 %vm329_vm0, %v330_v5  ;;  %245 = vmatprep.mubr.msk.f32.mxu1 %vm329_vm0, %v330_v5  ;;  %v28_v7 = vld [vmem:[%s393_s2] sm:$0xff]  ;;  %v272_v9 = vpack.i.bf16 %v225_v2, %v29_v1  ;;  %s333_s30 = smov 126   ;;  %vm37_vm1 = vcmask 1043456   ;;  %vm334_vm2 = vmmov 1   ;;  %s335_s0 = smov [#allocation5]  }
  0x15   :  { %277 = vset.pattern.permute.xlu1 %v331_v8  ;;  %278 = vset.pattern.permute.xlu0 %v331_v8  ;;  %vm250_vm3 = vmpackc.low %vm37_vm1, %vm334_vm2  ;;  %v27_v20 = vld [vmem:[#allocation2] sm:$0xff]  ;;  %vm44_vm4 = vcmask 97280   ;;  %s211_s2 = sshll.u32 %s335_s0, 4  ;;  %vm120_vm5 = vcmask 113664   ;;  %s212_s2 = int_to_ptr.vmem [resolvable:$true] %s211_s2 }
  0x16   :  { %v267_v6 = vpack.i.bf16 %v125_v4, %v31_v3  ;;  %41 = vperm.xlu1 %277, %v28_v7   ;;  %s301_s4 = scalar_lea.vmem %s212_s2, 256  ;;  %p306_p9 = scmp.lt.s32.totalorder %s212_s2, %s212_s2 }
  0x17   :  { %p302_p8 = scmp.ne.s32.totalorder %s212_s2, %s301_s4  ;;  %p307_p10 = scmp.lt.s32.totalorder %s301_s4, %s301_s4 }
  0x18   :  { %268 = vrot.lane.b32.xlu0 %v267_v6, %s332_s29 }
  0x19   :  { %p308_p11 = por %p307_p10, %p306_p9 }
  0x1b   :  { %p309_p12 = pnand %p308_p11, %p302_p8 }
  0x1c   :  { %273 = vrot.lane.b32.xlu0 %v272_v9, %s333_s30 }
  0x8a   :  { %v269_v10 = vpop.permute.xlu0 %268 }
  0x8b   :  { %v271_v11 = vunpack.i.h.bf16 %v269_v10  ;;  %v270_v12 = vunpack.i.l.bf16 %v269_v10 }
  0x8d   :  { %v38_v16 = vsel %vm37_vm1, %v29_v1, %v270_v12  ;;  %v131_v17 = vsel %vm37_vm1, %v225_v2, %v271_v11 }
  0x8e   :  { %v274_v13 = vpop.permute.xlu0 %273 }
  0x8f   :  { %v276_v14 = vunpack.i.h.bf16 %v274_v13  ;;  %v275_v15 = vunpack.i.l.bf16 %v274_v13 }
  0x91   :  { %v249_v18 = vpack.c.bf16 %v275_v15, %v38_v16  ;;  %v253_v19 = vpack.c.bf16 %v276_v14, %v131_v17 }
  0x93   :  { %251 = vmatpush3.bf16.msk.msra.mxu0 %vm250_vm3, %v249_v18  ;;  %255 = vmatpush3.bf16.msk.msra.mxu1 %vm250_vm3, %v253_v19 }
  0x95   :  { %v42_v21 = vpop.permute.xlu1 %41 }
  0x96   :  { %239 = vmatmul.mubr.msk.f32.vlgmr.msra.gmra.mrb[0].mxu0 %vm44_vm4, %v27_v20  ;;  %246 = vmatmul.mubr.msk.f32.vlgmr.msra.gmra.mrb[0].mxu1 %vm44_vm4, %v27_v20 }
 0x169   :  { %v116_v22 = vpop.f32.mrb[0].mxu0  ;;  %v200_v23 = vpop.f32.mrb[0].mxu1 }
 0x16a   :  { %v117_v24 = vadd.f32 %v116_v22, %v42_v21  ;;  %v201_v25 = vadd.f32 %v200_v23, %v42_v21  ;;  %v240_v26 = vpop.f32.mrb[1].mxu0  ;;  %v247_v27 = vpop.f32.mrb[1].mxu1 }
 0x16c   :  { %121 = vst.msk [vmem:[#allocation5] sm:$0xff] %vm120_vm5, %v117_v24  ;;  %205 = vst.msk [vmem:[#allocation5 + $0x8] sm:$0xff] %vm120_vm5, %v201_v25 }
 0x16d   :  { %312 = shalt.err (!%p309_p12)
}
 0x16e   :  { %s313_s7 = scalar_lea.hbm %s394_s3, 256 }
 0x16f   :  { %p314_p13 = scmp.ne.s32.totalorder %s394_s3, %s313_s7  ;;  %p317_p0 = scmp.lt.u32.totalorder %s313_s7, %s394_s3 }
 0x171   :  { %p319_p1 = pnand %p317_p0, %p314_p13 }
 0x173   :  { %322 = shalt.err (!%p319_p1)
}
 0x174   :  { %s336_s12 = smov 128   ;;  %s337_s13 = smov 8  }
 0x175   :  { %217 = dma.vmem_to_hbm [thread:$0]  %s212_s2, 256, %s394_s3, [#allocation4], %s336_s12, %s336_s12, %s337_s13  }
 0x176   :  { %325 = dma.done.wait [#allocation4], 256  }
 0x177   :  { %326 = vsyncadd [#allocation4], 4294967040 }
 0x178   :  { %221 = vsyncpa [#allocation3], 1 }
 0x179   :  { %222 = vsyncpa [#allocation4], 1 }

</bundles_post_ra>
